<compile_context>
chip_gen: v7x
topology: tpu7x:2x2x1
jax: 0.10.0
libtpu: 0.0.40
codegen_flags: <defaults>
</compile_context>

<pallas_src>
import jax
import jax.numpy as jnp
from jax.experimental import pallas as pl
from jax.experimental.pallas import tpu as pltpu


def _conv1x1_vpu_kernel(x_ref, w_ref, b_ref, o_ref):
    """C_out == 1 path: one broadcast multiply + one sublane reduce (no MXU).

    x_ref: (bN, C_in, tHW)  w_ref: (C_in, 1)  b_ref: (1, 1)  o_ref: (bN, 1, tHW)
    """
    # Cast only the tiny weight column to f32; x is upcast element-wise inside
    # the fused multiply (no materialized full-block f32 copy of x), and the
    # channel accumulation happens in f32.
    w = w_ref[...].astype(jnp.float32)[None, :, :]        # (1, C_in, 1)
    b = b_ref[...].astype(jnp.float32)[None, :, :]        # (1, 1, 1)
    y = jnp.sum(x_ref[...] * w, axis=1, keepdims=True)    # (bN, 1, tHW) f32
    o_ref[...] = (y + b).astype(o_ref.dtype)


def _conv1x1_mxu_kernel(x_ref, w_ref, b_ref, o_ref):
    """General path: (tCO, C_in) @ (C_in, tHW) on the MXU, per batch element.

    x_ref: (bN, C_in, tHW)  w_ref: (tCO, C_in)  b_ref: (tCO, 1)  o_ref: (bN, tCO, tHW)
    """
    w = w_ref[...]
    b = b_ref[...].astype(jnp.float32)                    # (tCO, 1)
    for i in range(x_ref.shape[0]):                       # bN is small & static -> unrolls
        y = jnp.dot(w, x_ref[i], preferred_element_type=jnp.float32)  # (tCO, tHW)
        o_ref[i] = (y + b).astype(o_ref.dtype)


def predict_forward(x_nchw, weight, bias, *, target_block_bytes=2 << 20, max_bn=8):
    """Equivalent of Predict.forward (nn.Conv2d(in_planes, out_planes, 1)).

    x_nchw : (N, C_in, H, W)
    weight : (C_out, C_in, 1, 1)   (PyTorch conv weight layout)
    bias   : (C_out,)
    returns: (N, C_out, H, W)
    """
    N, C_in, H, W = x_nchw.shape
    C_out = weight.shape[0]
    HW = H * W

    # NCHW-native view: free reshape of the trailing dims, no transpose.
    x3d = x_nchw.reshape(N, C_in, HW)

    xbytes = jnp.dtype(x_nchw.dtype).itemsize
    wbytes = jnp.dtype(weight.dtype).itemsize

    # --- Spatial / batch tiling: aim for ~2 MiB input blocks ------------------
    # (good on v6e/v7x; still comfortably below v5e's 16 MiB scoped default
    # when double-buffered).
    target_hw = max(128, target_block_bytes // (xbytes * C_in))
    if HW > target_hw:
        # Large spatial extent: tile H*W, one batch element per grid step.
        bN = 1
        t_hw = max(128, (target_hw // 128) * 128)          # lane-aligned tile
    else:
        # Small spatial extent: take full H*W and pack several batch elements
        # per step to amortize the fixed per-grid-step overhead.
        t_hw = HW
        bN = max(1, min(N, max_bn, target_hw // HW))

    # --- C_out blocking (keeps huge channel counts off the VMEM cliff) --------
    t_co = C_out if C_out <= 256 else 256
    # TODO(synk): for very large C_in (multi-MiB weight tiles) add a C_in
    # reduction grid axis with a VMEM f32 accumulator + pl.when init/finalize.

    # --- Guarantee >= 2 grid steps so both v7x TensorCores get work -----------
    n_b, n_co, n_hw = pl.cdiv(N, bN), pl.cdiv(C_out, t_co), pl.cdiv(HW, t_hw)
    if n_b * n_co * n_hw == 1:
        if N >= 2:
            bN = (N + 1) // 2
            n_b = pl.cdiv(N, bN)
        elif HW >= 256:
            t_hw = max(128, ((HW // 2) // 128) * 128)
            n_hw = pl.cdiv(HW, t_hw)
    grid = (n_b, n_co, n_hw)

    # --- Kernel / parameter layout --------------------------------------------
    w2d = weight.reshape(C_out, C_in)
    use_vpu = (C_out == 1)          # MXU for everything else (crossover lowered)
    if use_vpu:
        kernel = _conv1x1_vpu_kernel
        w_arg = w2d.T                                    # (C_in, 1): C_in on sublanes
        w_spec = pl.BlockSpec((C_in, 1), lambda b, co, hw: (0, 0))
        b_arg = bias.reshape(1, 1)
        b_spec = pl.BlockSpec((1, 1), lambda b, co, hw: (0, 0))
    else:
        kernel = _conv1x1_mxu_kernel
        w_arg = w2d                                      # (C_out, C_in)
        w_spec = pl.BlockSpec((t_co, C_in), lambda b, co, hw: (co, 0))
        b_arg = bias.reshape(C_out, 1)
        b_spec = pl.BlockSpec((t_co, 1), lambda b, co, hw: (co, 0))

    # --- VMEM budget guard (v5e's scoped default is only 16 MiB) --------------
    x_blk = bN * C_in * t_hw * xbytes
    o_blk = bN * t_co * t_hw * xbytes
    w_blk = (C_in if use_vpu else t_co * C_in) * wbytes
    est_vmem = 2 * (x_blk + o_blk + w_blk) + (1 << 16)   # double-buffered + slack
    cp_kwargs = dict(dimension_semantics=("parallel", "parallel", "parallel"))
    if est_vmem > (12 << 20):
        cp_kwargs["vmem_limit_bytes"] = int(min(est_vmem + (4 << 20), 56 << 20))
    compiler_params = pltpu.CompilerParams(**cp_kwargs)

    # Advisory cost hint so XLA schedules surrounding HLOs around a
    # memory-bound custom call.
    cost = pl.CostEstimate(
        flops=2 * N * C_out * C_in * HW,
        transcendentals=0,
        bytes_accessed=(N * C_in * HW * xbytes            # read x
                        + N * C_out * HW * xbytes         # write y
                        + C_out * C_in * wbytes           # read weight
                        + C_out * wbytes),                # read bias
    )

    y3d = pl.pallas_call(
        kernel,
        out_shape=jax.ShapeDtypeStruct((N, C_out, HW), x_nchw.dtype),
        grid=grid,
        in_specs=[
            pl.BlockSpec((bN, C_in, t_hw), lambda b, co, hw: (b, 0, hw)),
            w_spec,
            b_spec,
        ],
        out_specs=pl.BlockSpec((bN, t_co, t_hw), lambda b, co, hw: (b, co, hw)),
        compiler_params=compiler_params,
        cost_estimate=cost,
    )(x3d, w_arg, b_arg)

    # (N, C_out, H*W) -> (N, C_out, H, W): free reshape, already NCHW.
    return y3d.reshape(N, C_out, H, W)


if __name__ == "__main__":
    key = jax.random.PRNGKey(0)
    k_x, k_w, k_b = jax.random.split(key, 3)

    # Shapes implied by Predict(in_planes=32, out_planes=1, kernel_size=1).
    N, C_in, C_out, H, W = 2, 32, 1, 16, 16

    x = jax.random.normal(k_x, (N, C_in, H, W), dtype=jnp.float32)
    weight = jax.random.normal(k_w, (C_out, C_in, 1, 1), dtype=jnp.float32) * 0.1
    bias = jax.random.normal(k_b, (C_out,), dtype=jnp.float32) * 0.1

    y = predict_forward(x, weight, bias)
    jax.block_until_ready(y)

    # Pure-JAX reference (1x1 conv == channel contraction + bias).
    y_ref = jnp.einsum("nchw,oc->nohw", x, weight.reshape(C_out, C_in)) \
            + bias.reshape(1, C_out, 1, 1)
    assert y.shape == (N, C_out, H, W)
    assert jnp.allclose(y, y_ref, atol=1e-5, rtol=1e-5)

    print("KERNEL_OK")
</pallas_src>

<mosaic_0001>
module attributes {stable_mosaic.version = 11 : i64} {
  func.func @_conv1x1_vpu_kernel(%arg0: i32, %arg1: i32, %arg2: i32, %arg3: memref<1x32x256xf32, #tpu.memory_space<vmem>>, %arg4: memref<32x1xf32, #tpu.memory_space<vmem>>, %arg5: memref<1x1xf32, #tpu.memory_space<vmem>>, %arg6: memref<1x1x256xf32, #tpu.memory_space<vmem>>) attributes {dimension_semantics = [#tpu.dimension_semantics<parallel>, #tpu.dimension_semantics<parallel>, #tpu.dimension_semantics<parallel>], iteration_bounds = array<i64: 2, 1, 1>, scalar_prefetch = 0 : i64, scratch_operands = 0 : i64, tpu.core_type = #tpu.core_type<tc>, window_params = [{transform_indices = @transform_0, window_bounds = array<i64: 1, 32, 256>}, {pipeline_mode = #tpu.pipeline_mode<synchronous>, transform_indices = @transform_1, window_bounds = array<i64: 32, 1>}, {pipeline_mode = #tpu.pipeline_mode<synchronous>, transform_indices = @transform_2, window_bounds = array<i64: 1, 1>}, {transform_indices = @transform_3, window_bounds = array<i64: 1, 1, 256>}]} {
    %c0 = arith.constant 0 : index
    %c0_0 = arith.constant 0 : index
    %0 = vector.load %arg4[%c0, %c0_0] : memref<32x1xf32, #tpu.memory_space<vmem>>, vector<32x1xf32>
    %1 = vector.shape_cast %0 : vector<32x1xf32> to vector<1x32x1xf32>
    %c0_1 = arith.constant 0 : index
    %c0_2 = arith.constant 0 : index
    %2 = vector.load %arg5[%c0_1, %c0_2] : memref<1x1xf32, #tpu.memory_space<vmem>>, vector<1x1xf32>
    %3 = vector.shape_cast %2 : vector<1x1xf32> to vector<1x1x1xf32>
    %c0_3 = arith.constant 0 : index
    %c0_4 = arith.constant 0 : index
    %c0_5 = arith.constant 0 : index
    %4 = vector.load %arg3[%c0_3, %c0_4, %c0_5] : memref<1x32x256xf32, #tpu.memory_space<vmem>>, vector<1x32x256xf32>
    %5 = vector.broadcast %1 : vector<1x32x1xf32> to vector<1x32x256xf32>
    %6 = arith.mulf %4, %5 : vector<1x32x256xf32>
    %cst = arith.constant dense<0.000000e+00> : vector<1x256xf32>
    %7 = vector.multi_reduction <add>, %6, %cst [1] : vector<1x32x256xf32> to vector<1x256xf32>
    %8 = vector.shape_cast %7 : vector<1x256xf32> to vector<1x1x256xf32>
    %9 = vector.broadcast %3 : vector<1x1x1xf32> to vector<1x1x256xf32>
    %10 = arith.addf %8, %9 : vector<1x1x256xf32>
    %c0_6 = arith.constant 0 : index
    %c0_7 = arith.constant 0 : index
    %c0_8 = arith.constant 0 : index
    %11 = vector.load %arg6[%c0_6, %c0_7, %c0_8] : memref<1x1x256xf32, #tpu.memory_space<vmem>>, vector<1x1x256xf32>
    tpu.vector_store %arg6[%c0_6, %c0_7, %c0_8], %10 {strides = array<i32>} : memref<1x1x256xf32, #tpu.memory_space<vmem>>, vector<1x1x256xf32>,
    return
  }
  func.func @transform_0(%arg0: i32, %arg1: i32, %arg2: i32) -> (i32, i32, i32) {
    %c0_i32 = arith.constant 0 : i32
    %c0_i32_0 = arith.constant 0 : i32
    return %arg0, %c0_i32, %arg2 : i32, i32, i32
  }
  func.func @transform_1(%arg0: i32, %arg1: i32, %arg2: i32) -> (i32, i32) {
    %c0_i32 = arith.constant 0 : i32
    %c0_i32_0 = arith.constant 0 : i32
    %c0_i32_1 = arith.constant 0 : i32
    return %c0_i32, %c0_i32_0 : i32, i32
  }
  func.func @transform_2(%arg0: i32, %arg1: i32, %arg2: i32) -> (i32, i32) {
    %c0_i32 = arith.constant 0 : i32
    %c0_i32_0 = arith.constant 0 : i32
    %c0_i32_1 = arith.constant 0 : i32
    return %c0_i32, %c0_i32_0 : i32, i32
  }
  func.func @transform_3(%arg0: i32, %arg1: i32, %arg2: i32) -> (i32, i32, i32) {
    %c0_i32 = arith.constant 0 : i32
    return %arg0, %arg1, %arg2 : i32, i32, i32
  }
}

</mosaic_0001>

<bundles_post_ra>
// kernel: tpu_custom_call.1
= control target key start
LH: loop header
LB: loop body
LE: loop exit
PB: predicated region body
PF: predicated region fallthrough
CT: control target
= control target key end

     0   :  { %s835_s0 = inlined_call_operand.hbm [shape: f32[2,32,256], index: 0, kind: input, shape index: {}]   ;;  %s836_s1 = inlined_call_operand.vmem [shape: f32[32,1], index: 1, kind: input, shape index: {}]   ;;  %s837_s2 = inlined_call_operand.<no memory space> [shape: f32[1,1], index: 2, kind: input, shape index: {}]   ;;  %s838_s3 = inlined_call_operand.hbm [shape: f32[2,1,256], index: 3, kind: output, shape index: {}]  }
   0x1   :  { %v8_v0 = vstv %s837_s2 }
   0x2   :  { %9 = vst [vmem:[#allocation2] sm:$0x1] %v8_v0 }
   0x3   :  { %10 = vsyncpa [#allocation4], 0 }
   0x4   :  { %12 = vsyncpa [#allocation4 + $0x1], 0 }
   0x5   :  { %13 = vsyncpa [#allocation5], 0 }
   0x6   :  { %15 = vsyncpa [#allocation5 + $0x1], 0  ;;  %s649_s14 = smov 0   ;;  %s651_s15 = smov 0  }
   0x7   :  { %s653_s16 = smov 0   ;;  %s655_s17 = smov 0  }
   0x8   :  { %s657_s18 = smov 0   ;;  %s659_s19 = smov 0  }
   0x9 LB: > { %s421_s2 = sadd.s32 4294967295, %s618_s19   ;;  %s422_s20 = sadd.s32 4294967294, %s618_s19   ;;  %s618_s19 = sphi %s659_s19, %s21_s19   ;;  %s614_s18 = sphi %s657_s18, %s853_s18   ;;  %s610_s17 = sphi %s655_s17, %s852_s17   ;;  %s606_s16 = sphi %s653_s16, %s851_s16   ;;  %s602_s15 = sphi %s651_s15, %s850_s15   ;;  %s598_s14 = sphi %s649_s14, %s849_s14  }
   0xa   : > { %s40_s21 = sadd.s32 1, %s614_s18  ;;  %s49_s22 = sadd.s32 1, %s606_s16 }
   0xb   : > { %p42_p0 = scmp.ge.s32.totalorder %s40_s21, 2  ;;  %p56_p1 = scmp.ne.s32.totalorder %s606_s16, %s602_s15 }
   0xc   : > { %p57_p2 = scmp.eq.s32.totalorder %s618_s19, 0  ;;  %p62_p3 = scmp.ne.s32.totalorder %s602_s15, %s598_s14 }
   0xd   : > { %s855_s21 = smov (%p42_p0, %s40_s21), 0  ;;  %p63_p5 = scmp.eq.s32.totalorder %s421_s2, 0 }
   0xe   : > { %p690_p4 = por %p57_p2, %p56_p1  ;;  %s44_s24 = ssub.s32 %s614_s18, %s855_s21 }
   0xf   : > { %p132_p6 = scmp.eq.s32.totalorder %s421_s2, 1  ;;  %p47_p7 = scmp.eq.s32.totalorder %s44_s24, 0 }
  0x10   : > { %p696_p8 = por %p63_p5, %p62_p3  ;;  %p138_p10 = scmp.eq.s32.totalorder %s422_s20, 1 }
  0x11   : > { %p700_p9 = por %p132_p6, %p56_p1  ;;  %p450_p13 = scmp.lt.s32.totalorder %s618_s19, 2 }
  0x12   : > { %s705_s27 = scalar_select %p47_p7, %s606_s16, %s49_s22  }
  0x13   : > { %s842_s26 = scalar_select %p700_p9, 1, 0 }
  0x14   : > { %p707_p11 = por %p138_p10, %p62_p3  ;;  %s164_s29 = sand.u32 1, %s606_s16  }
  0x15   : > { %s425_s30 = sshll.u32 %s164_s29, 6  ;;  %s436_s4 = sshll.u32 %s614_s18, 10 }
  0x16   : > { %s843_s28 = scalar_select %p707_p11, 1, 0 }
  0x17   : > { %s718_s7 = scalar_lea.hbm %s835_s0, %s436_s4  ;;  %s168_s8 = scalar_lea.vmem [#allocation3], %s425_s30 }
  0x18   : > { %s177_s9 = sshll.u32 %s168_s8, 4  ;;  %p724_p0 = pnand %p450_p13, %p690_p4  ;;  %s720_s9 = int_to_ptr.vmem [resolvable:$true] %s177_s9 }
  0x19   : > { %s729_s11 = scalar_lea.sflag [#allocation4], %s164_s29  ;;  %s506_s12 = scalar_lea.hbm %s718_s7, 1024 }
  0x1a   : > { %p507_p2 = scmp.ne.s32.totalorder %s718_s7, %s506_s12  ;;  %p508_p3 = pneg %p724_p0 }
  0x1b   : > { %s511_s20 = scalar_lea.hbm %s835_s0, 2048  ;;  %p512_p4 = scmp.lt.u32.totalorder %s718_s7, %s835_s0 }
  0x1c   : > { %p509_p5 = pnand %p508_p3, %p507_p2  ;;  %p513_p7 = scmp.lt.u32.totalorder %s511_s20, %s506_s12 }
  0x1d   : > { %p515_p13 = scmp.lt.u32.totalorder %s506_s12, %s718_s7 }
  0x1e   : > { %p510_p6 = pneg %p509_p5  ;;  %p514_p10 = por %p513_p7, %p512_p4 }
  0x20   : > { %p516_p12 = por %p515_p13, %p514_p10 }
  0x22   : > { %p517_p1 = pnand %p516_p12, %p510_p6 }
  0x24   : > { %520 = shalt.err (!%p517_p1)
}
  0x25   : > { %s521_s24 = scalar_lea.vmem %s720_s9, 1024  ;;  %s620_s29 = smov [#allocation3]  }
  0x26   : > { %p522_p2 = scmp.ne.s32.totalorder %s720_s9, %s521_s24  ;;  %s526_s30 = sshll.u32 %s620_s29, 4  ;;  %s527_s30 = int_to_ptr.vmem [resolvable:$false] %s526_s30 }
  0x27   : > { %s528_s4 = scalar_lea.vmem %s527_s30, 2048  ;;  %p529_p9 = scmp.lt.s32.totalorder %s720_s9, %s527_s30 }
  0x28   : > { %p524_p5 = pnand %p522_p2, %p508_p3  ;;  %p530_p4 = scmp.lt.s32.totalorder %s528_s4, %s521_s24 }
  0x2a   : > { %p525_p11 = pneg %p524_p5  ;;  %p531_p7 = por %p530_p4, %p529_p9 }
  0x2c   : > { %p532_p10 = pnand %p531_p7, %p525_p11 }
  0x2e   : > { %535 = shalt.err (!%p532_p10)
}
  0x2f   : > { %s621_s5 = smov 256   ;;  %s622_s6 = smov 16  }
  0x30   : > { %445 = dma.hbm_to_vmem [thread:$0]  (!%p724_p0), %s718_s7, 1024, %s720_s9, %s729_s11, %s621_s5, %s621_s5, %s622_s6  }
  0x31   : > { %p185_p12 = scmp.lt.s32.totalorder %s618_s19, 3  ;;  %p845_p1 = scmp.ge.s32.totalorder %s618_s19, 1 }
  0x33   : > { %p186_p3 = pnand %p845_p1, %p185_p12 }
  0x34   : > { %s761_s8 = sand.u32 (!%p186_p3), 1, %s602_s15  }
  0x35   : > { %189 = sbr.rel (%p186_p3) target bundleno = 237 (0xed), region = 32  ;;  %s429_s12 = sshll.u32 (!%p186_p3), %s761_s8, 6 }
  0x36   : > { %s192_s13 = scalar_lea.sflag (!%p186_p3), [#allocation4], %s761_s8  ;;  %s195_s2 = scalar_lea.vmem (!%p186_p3), [#allocation3], %s429_s12 }
  0x3c   : > { %589 = dma.done.wait (%p696_p8), %s192_s13, 1024  }
  0x3d   : > { %591 = vsyncadd (%p696_p8), %s192_s13, 4294966272  ;;  %v623_v1 = vmov 0   ;;  %v222_v2 = vld [vmem:[%s836_s1 + $0x10] sm:$0xff]  ;;  %v220_v3 = vld [vmem:[%s836_s1] sm:$0xff]  ;;  %v284_v33 = vlaneseq  ;;  %v624_v41 = vmov 1966171168  }
  0x3e   : > { %505 = vset.pattern.permute.xlu1 %v623_v1  ;;  %504 = vset.pattern.permute.xlu0 %v623_v1  ;;  %v223_v4 = vld [vmem:[%s836_s1 + $0x18] sm:$0xff]  ;;  %v221_v5 = vld [vmem:[%s836_s1 + $0x8] sm:$0xff]  ;;  %v224_v6 = vld [vmem:[#allocation2] sm:$0x1]  ;;  %v294_v42 = vunpack.c.l.s4 %v624_v41  ;;  %s430_s24 = sshll.u32 %s761_s8, 1  ;;  %s437_s29 = sshll.u32 %s610_s17, 5 }
  0x3f   : > { %245 = vperm.xlu1 %505, %v222_v2   ;;  %235 = vperm.xlu0 %504, %v220_v3   ;;  %v225_v9 = vld [vmem:[%s195_s2] sm:$0xff]  ;;  %v226_v10 = vld [vmem:[%s195_s2 + $0x8] sm:$0xff]  ;;  %v227_v11 = vld [vmem:[%s195_s2 + $0x10] sm:$0xff]  ;;  %v285_v38 = vshrl.u32 %v284_v33, 7  ;;  %s217_s30 = scalar_lea.vmem [#allocation6], %s430_s24  ;;  %vm310_vm0 = vcmp.lt.s32.totalorder %v284_v33, 256  ;;  %s786_s12 = scalar_lea.hbm %s838_s3, %s437_s29 }
  0x40   : > { %v228_v12 = vld [vmem:[%s195_s2 + $0x18] sm:$0xff]  ;;  %v229_v13 = vld [vmem:[%s195_s2 + $0x20] sm:$0xff]  ;;  %v230_v14 = vld [vmem:[%s195_s2 + $0x28] sm:$0xff]  ;;  %v295_v49 = vunpack.c.0.s8 %v294_v42  ;;  %s332_s4 = sshll.u32 %s217_s30, 4  ;;  %s314_s13 = scalar_lea.sflag [#allocation5], %s761_s8  ;;  %s788_s4 = int_to_ptr.vmem [resolvable:$true] %s332_s4 }
  0x41   : > { %v231_v20 = vld [vmem:[%s195_s2 + $0x30] sm:$0xff]  ;;  %v232_v21 = vld [vmem:[%s195_s2 + $0x38] sm:$0xff]  ;;  %v286_v45 = vsub.s32 0, %v285_v38  ;;  %s536_s2 = scalar_lea.vmem %s788_s4, 32  ;;  %p846_p9 = scmp.ne.s32.totalorder %s842_s26, 0 }
  0x42   : > { %v298_v53 = vsub.s32 %v295_v49, %v285_v38  ;;  %p537_p8 = scmp.ne.s32.totalorder %s788_s4, %s536_s2  ;;  %s625_s17 = smov [#allocation6]  }
  0x43   : > { %250 = vperm.xlu1 %505, %v223_v4   ;;  %240 = vperm.xlu0 %504, %v221_v5   ;;  %s540_s7 = sshll.u32 %s625_s17, 4  ;;  %s541_s7 = int_to_ptr.vmem [resolvable:$false] %s540_s7 }
  0x44   : > { %p538_p11 = pnand %p537_p8, %p846_p9  ;;  %s542_s9 = scalar_lea.vmem %s541_s7, 64 }
  0x45   : > { %p543_p6 = scmp.lt.s32.totalorder %s788_s4, %s541_s7  ;;  %p544_p13 = scmp.lt.s32.totalorder %s542_s9, %s536_s2 }
  0x46   : > { %p539_p0 = pneg %p538_p11 }
  0x47   : > { %281 = vperm.xlu0 %504, %v224_v6   ;;  %p545_p2 = por %p544_p13, %p543_p6 }
  0x49   : > { %p546_p5 = pnand %p545_p2, %p539_p0 }
  0xbe   : > { %v246_v7 = vpop.permute.xlu1 %245  ;;  %v236_v8 = vpop.permute.xlu0 %235 }
  0xbf   : > { %v253_v16 = vmul.f32 %v236_v8, %v225_v9  ;;  %v254_v17 = vmul.f32 %v236_v8, %v226_v10  ;;  %v257_v23 = vmul.f32 %v246_v7, %v229_v13  ;;  %v258_v24 = vmul.f32 %v246_v7, %v230_v14 }
  0xc2   : > { %v241_v15 = vpop.permute.xlu0 %240  ;;  %v251_v22 = vpop.permute.xlu1 %250 }
  0xc3   : > { %v255_v18 = vmul.f32 %v241_v15, %v227_v11  ;;  %v256_v19 = vmul.f32 %v241_v15, %v228_v12  ;;  %v259_v27 = vmul.f32 %v251_v22, %v231_v20  ;;  %v260_v28 = vmul.f32 %v251_v22, %v232_v21 }
  0xc5   : > { %v261_v25 = vadd.f32 %v255_v18, %v253_v16  ;;  %v270_v26 = vadd.f32 %v256_v19, %v254_v17 }
  0xc6   : > { %v282_v46 = vpop.permute.xlu0 %281 }
  0xc7   : > { %v262_v29 = vadd.f32 %v261_v25, %v257_v23  ;;  %v271_v30 = vadd.f32 %v270_v26, %v258_v24  ;;  %v287_v52 = vrot.slane %v282_v46, %v286_v45 }
  0xc9   : > { %v263_v31 = vadd.f32 %v262_v29, %v259_v27  ;;  %v272_v32 = vadd.f32 %v271_v30, %v260_v28 }
  0xcb   : > { %v264_v34 = vrot.slane %v263_v31, 4  ;;  %v273_v35 = vrot.slane %v272_v32, 4 }
  0xcd   : > { %v265_v36 = vadd.f32 %v264_v34, %v263_v31  ;;  %v274_v37 = vadd.f32 %v273_v35, %v272_v32 }
  0xcf   : > { %v266_v39 = vrot.slane %v265_v36, 2  ;;  %v275_v40 = vrot.slane %v274_v37, 2 }
  0xd1   : > { %v267_v43 = vadd.f32 %v266_v39, %v265_v36  ;;  %v276_v44 = vadd.f32 %v275_v40, %v274_v37 }
  0xd3   : > { %v268_v47 = vrot.slane %v267_v43, 1  ;;  %v277_v48 = vrot.slane %v276_v44, 1 }
  0xd5   : > { %v269_v50 = vadd.f32 %v268_v47, %v267_v43  ;;  %v278_v51 = vadd.f32 %v277_v48, %v276_v44 }
  0xd7   : > { %v288_v54 = vadd.f32 %v287_v52, %v269_v50  ;;  %v289_v55 = vadd.f32 %v287_v52, %v278_v51 }
  0xd9   : > { %v292_v56 = vcombine.low %v288_v54, %v289_v55 }
  0xdb   : > { %v299_v57 = vrot.slane %v292_v56, %v298_v53 }
  0xdd   : > { %v306_v58 = vrot.slane %v299_v57, %v298_v53 }
  0xdf   : > { %312 = vst.msk [vmem:[%s217_s30] sm:$0x3] %vm310_vm0, %v306_v58 }
  0xe0   : > { %549 = shalt.err (!%p546_p5)
}
  0xe1   : > { %s550_s8 = scalar_lea.hbm %s786_s12, 32  ;;  %s554_s20 = scalar_lea.hbm %s838_s3, 64 }
  0xe2   : > { %p551_p4 = scmp.ne.s32.totalorder %s786_s12, %s550_s8  ;;  %p555_p12 = scmp.lt.u32.totalorder %s786_s12, %s838_s3 }
  0xe3   : > { %p556_p1 = scmp.lt.u32.totalorder %s554_s20, %s550_s8  ;;  %p558_p8 = scmp.lt.u32.totalorder %s550_s8, %s786_s12 }
  0xe4   : > { %p552_p7 = pnand %p551_p4, %p846_p9 }
  0xe5   : > { %p557_p3 = por %p556_p1, %p555_p12 }
  0xe6   : > { %p553_p10 = pneg %p552_p7 }
  0xe7   : > { %p559_p11 = por %p558_p8, %p557_p3 }
  0xe9   : > { %p560_p0 = pnand %p559_p11, %p553_p10 }
  0xeb   : > { %563 = shalt.err (!%p560_p0)
}
  0xec   : > { %440 = dma.vmem_to_hbm [thread:$0]  (%p846_p9), %s788_s4, 32, %s786_s12, %s314_s13  }
  0xed PF: > { %s344_s25 = sand.u32 1, %s598_s14   ;;  %p847_p6 = scmp.ne.s32.totalorder %s843_s28, 0 }
  0xee   : > { %p848_p13 = scmp.ge.s32.totalorder %s618_s19, 2  ;;  %s345_s24 = scalar_lea.sflag [#allocation5], %s344_s25 }
  0xf0   : > { %p447_p2 = pnand %p848_p13, %p847_p6 }
  0xf2   : > { %593 = dma.done.wait (!%p447_p2), %s345_s24, 32  }
  0xf3   : > { %595 = vsyncadd (!%p447_p2), %s345_s24, 4294967264  ;;  %s21_s19 = sadd.s32 1, %s618_s19   ;;  %s849_s14 = smov %s602_s15 }
  0xf4   : > { %p18_p5 = scmp.ge.s32.totalorder %s21_s19, 4   ;;  %s850_s15 = smov %s606_s16 }
  0xf5   : > { %s851_s16 = smov %s705_s27  ;;  %s852_s17 = smov %s614_s18 }
  0xf6   : > { %s853_s18 = smov %s855_s21  ;;  %20 = sbr.rel (!%p18_p5) target bundleno = 9 (0x9), region = 77 }
  0xfd   :  { %350 = vsyncpa [#allocation4], 1 }
  0xfe   :  { %352 = vsyncpa [#allocation4 + $0x1], 1 }
  0xff   :  { %353 = vsyncpa [#allocation5], 1 }
 0x100   :  { %355 = vsyncpa [#allocation5 + $0x1], 1 }

</bundles_post_ra>
